<compile_context>
chip_gen: v6e
topology: v6e:2x2x1
jax: 0.10.0
libtpu: 0.0.40
codegen_flags: <defaults>
</compile_context>

<pallas_src>
import jax
import jax.numpy as jnp
from jax.experimental import pallas as pl
from jax.experimental.pallas import tpu as pltpu


def _make_lambda_kernel(f, out_dtype):
    """Kernel body applying `f` element-wise to its tile (f32 math for low-prec)."""
    compute_in_f32 = (
        jnp.issubdtype(out_dtype, jnp.floating)
        and jnp.dtype(out_dtype).itemsize < 4
    )

    def kernel(x_ref, o_ref):
        x = x_ref[...]
        if compute_in_f32:
            x = x.astype(jnp.float32)
        o_ref[...] = f(x).astype(o_ref.dtype)

    return kernel


def _vmem_budget_bytes():
    """Per-generation budget for our pipeline buffers (leave ample headroom)."""
    cap = 128 << 20  # conservative fallback (v5e/v6e physical VMEM)
    try:
        info = pltpu.get_tpu_info()
        cap = int(getattr(info, "vmem_capacity_bytes", cap))
    except Exception:
        pass
    # Use ~1/3 of physical VMEM for our 4 resident blocks, capped at 48 MiB.
    # On v7x (64 MiB physical) this yields ~21 MiB; on v5e/v6e ~42 MiB.
    return min(cap // 3, 48 << 20)


def _choose_lanes(n):
    """Pick a wide, lane-dense last dim (multiple of 128) independent of H*W."""
    for lanes in (8192, 4096, 2048, 1024, 512, 256):
        if n >= 8 * lanes:
            return lanes
    return 128


def lambda_forward(f, x, *, target_block_bytes=2 << 20):
    """Pallas equivalent of Lambda(f).forward(x) for element-wise `f`.

    Works for any input shape; `f` must be a JAX-traceable element-wise fn.
    """
    orig_shape = x.shape
    dtype = x.dtype
    itemsize = jnp.dtype(dtype).itemsize
    n = int(x.size)

    # Native sublane packing multiple for the dtype (f32:8, bf16:16, int8/fp8:32).
    sub = {4: 8, 2: 16, 1: 32}.get(itemsize, 8)

    # Lane-dense layout decoupled from the trailing image dims.
    lanes = _choose_lanes(n)
    rows = pl.cdiv(n, lanes)

    # Block sizing by bytes, capped so 4 resident blocks (in+out, double-
    # buffered) fit the per-generation VMEM budget.
    vmem_budget = _vmem_budget_bytes()
    max_block_bytes = vmem_budget // 4
    block_bytes = min(target_block_bytes, max_block_bytes)
    row_tile = max(sub, (block_bytes // (lanes * itemsize)) // sub * sub)
    # Never bigger than the (sublane-rounded) number of rows actually present.
    row_tile = min(row_tile, pl.cdiv(rows, sub) * sub)

    ngrid = pl.cdiv(rows, row_tile)
    # v7x has 2 TensorCores; an even parallel grid splits cleanly across them.
    if ngrid > 1 and ngrid % 2 != 0:
        ngrid += 1
    padded_rows = ngrid * row_tile
    padded_n = padded_rows * lanes

    x_flat = x.reshape(-1)
    if padded_n != n:
        x_flat = jnp.pad(x_flat, (0, padded_n - n))
    x2d = x_flat.reshape(padded_rows, lanes)

    kernel = _make_lambda_kernel(f, dtype)

    cost = pl.CostEstimate(
        flops=3 * n,            # rough: mul + add + div per element (SiLU-like)
        transcendentals=n,      # one exp per element
        bytes_accessed=2 * n * itemsize,
    )

    out2d = pl.pallas_call(
        kernel,
        out_shape=jax.ShapeDtypeStruct((padded_rows, lanes), dtype),
        grid_spec=pltpu.PrefetchScalarGridSpec(
            num_scalar_prefetch=0,
            grid=(ngrid,),
            in_specs=[pl.BlockSpec((row_tile, lanes), lambda i: (i, 0))],
            out_specs=pl.BlockSpec((row_tile, lanes), lambda i: (i, 0)),
        ),
        compiler_params=pltpu.CompilerParams(
            dimension_semantics=("parallel",),
            vmem_limit_bytes=int(vmem_budget + (2 << 20)),
        ),
        cost_estimate=cost,
    )(x2d)

    out_flat = out2d.reshape(-1)
    if padded_n != n:
        out_flat = out_flat[:n]
    return out_flat.reshape(orig_shape)


if __name__ == "__main__":
    # The element-wise function wrapped by Lambda (SiLU for this example).
    f = lambda x: x * jax.nn.sigmoid(x)

    key = jax.random.PRNGKey(0)
    x = jax.random.normal(key, (2, 4, 16, 16), dtype=jnp.float32)  # NCHW

    out = lambda_forward(f, x)
    out = jax.block_until_ready(out)

    # Reference (plain JAX) — same semantics as PyTorch Lambda(f)(x).
    ref = f(x)
    assert out.shape == x.shape and out.dtype == x.dtype
    assert jnp.allclose(out, ref, atol=1e-6, rtol=1e-6), "mismatch vs reference"

    print("KERNEL_OK")
</pallas_src>

<mosaic_0001>
module attributes {stable_mosaic.version = 11 : i64} {
  func.func @kernel(%arg0: i32, %arg1: memref<8x256xf32, #tpu.memory_space<vmem>>, %arg2: memref<8x256xf32, #tpu.memory_space<vmem>>) attributes {dimension_semantics = [#tpu.dimension_semantics<parallel>], iteration_bounds = array<i64: 1>, scalar_prefetch = 0 : i64, scratch_operands = 0 : i64, tpu.core_type = #tpu.core_type<tc>, window_params = [{transform_indices = @transform_0, window_bounds = array<i64: 8, 256>}, {transform_indices = @transform_1, window_bounds = array<i64: 8, 256>}]} {
    %c0 = arith.constant 0 : index
    %c0_0 = arith.constant 0 : index
    %0 = vector.load %arg1[%c0, %c0_0] : memref<8x256xf32, #tpu.memory_space<vmem>>, vector<8x256xf32>
    %1 = arith.negf %0 : vector<8x256xf32>
    %2 = math.exp %1 : vector<8x256xf32>
    %cst = arith.constant 1.000000e+00 : f32
    %3 = vector.broadcast %cst : f32 to vector<8x256xf32>
    %4 = arith.addf %3, %2 : vector<8x256xf32>
    %5 = arith.divf %3, %4 : vector<8x256xf32>
    %6 = arith.mulf %0, %5 : vector<8x256xf32>
    %c0_1 = arith.constant 0 : index
    %c0_2 = arith.constant 0 : index
    %7 = vector.load %arg2[%c0_1, %c0_2] : memref<8x256xf32, #tpu.memory_space<vmem>>, vector<8x256xf32>
    tpu.vector_store %arg2[%c0_1, %c0_2], %6 {strides = array<i32>} : memref<8x256xf32, #tpu.memory_space<vmem>>, vector<8x256xf32>,
    return
  }
  func.func @transform_0(%arg0: i32) -> (i32, i32) {
    %c0_i32 = arith.constant 0 : i32
    %c0_i32_0 = arith.constant 0 : i32
    return %arg0, %c0_i32 : i32, i32
  }
  func.func @transform_1(%arg0: i32) -> (i32, i32) {
    %c0_i32 = arith.constant 0 : i32
    %c0_i32_0 = arith.constant 0 : i32
    return %arg0, %c0_i32 : i32, i32
  }
}

</mosaic_0001>

<bundles_post_ra>
// kernel: tpu_custom_call.1
= control target key start
LH: loop header
LB: loop body
LE: loop exit
PB: predicated region body
PF: predicated region fallthrough
CT: control target
= control target key end

     0   :  { %6 = vsyncpa [#allocation3], 0  ;;  %s128_s0 = inlined_call_operand.hbm [shape: f32[8,256], index: 0, kind: input, shape index: {}]   ;;  %s129_s1 = inlined_call_operand.hbm [shape: f32[8,256], index: 1, kind: output, shape index: {}]  }
   0x1   :  { %7 = vsyncpa [#allocation4], 0  ;;  %s110_s6 = smov [#allocation2]  }
   0x2   :  { %s14_s7 = sshll.u32 %s110_s6, 4  ;;  %s15_s7 = int_to_ptr.vmem [resolvable:$true] %s14_s7 }
   0x3   :  { %s74_s8 = scalar_lea.vmem %s15_s7, 256  ;;  %p79_p1 = scmp.lt.s32.totalorder %s15_s7, %s15_s7 }
   0x4   :  { %p75_p0 = scmp.ne.s32.totalorder %s15_s7, %s74_s8  ;;  %p80_p2 = scmp.lt.s32.totalorder %s74_s8, %s74_s8 }
   0x6   :  { %p81_p3 = por %p80_p2, %p79_p1 }
   0x8   :  { %p82_p4 = pnand %p81_p3, %p75_p0 }
   0xa   :  { %85 = shalt.err (!%p82_p4)
}
   0xb   :  { %17 = dma.hbm_to_vmem [thread:$0]  %s128_s0, 256, %s15_s7, [#allocation3]  }
   0xc   :  { %106 = dma.done.wait [#allocation3], 256  }
   0xd   :  { %107 = vsyncadd [#allocation3], 4294967040  ;;  %v21_v0 = vld [vmem:[#allocation2] sm:$0xff]  ;;  %v22_v1 = vld [vmem:[#allocation2 + $0x8] sm:$0xff]  ;;  %s111_s11 = smov [#allocation5]  }
   0xe   :  { %v54_v2 = vmul.f32 -1.442695, %v21_v0  ;;  %v55_v3 = vmul.f32 -1.442695, %v22_v1  ;;  %s45_s12 = sshll.u32 %s111_s11, 4  ;;  %s46_s12 = int_to_ptr.vmem [resolvable:$true] %s45_s12 }
   0xf   :  { %s86_s0 = scalar_lea.vmem %s46_s12, 256  ;;  %p91_p6 = scmp.lt.s32.totalorder %s46_s12, %s46_s12 }
  0x10   :  { %58 = vpow2.f32 %v54_v2  ;;  %p87_p5 = scmp.ne.s32.totalorder %s46_s12, %s86_s0  ;;  %p92_p7 = scmp.lt.s32.totalorder %s86_s0, %s86_s0 }
  0x11   :  { %60 = vpow2.f32 %v55_v3 }
  0x12   :  { %p93_p8 = por %p92_p7, %p91_p6 }
  0x14   :  { %p94_p9 = pnand %p93_p8, %p87_p5 }
  0x1d   :  { %v59_v4 = vpop.eup %58 }
  0x1e   :  { %v61_v5 = vpop.eup %60  ;;  %v29_v6 = vadd.f32 1.0, %v59_v4 }
  0x1f   :  { %v30_v7 = vadd.f32 1.0, %v61_v5 }
  0x20   :  { %62 = vrcp.f32 %v29_v6 }
  0x21   :  { %64 = vrcp.f32 %v30_v7 }
  0x2d   :  { %v63_v8 = vpop.eup %62 }
  0x2e   :  { %v65_v9 = vpop.eup %64  ;;  %v35_v10 = vmul.f32 %v63_v8, %v21_v0 }
  0x2f   :  { %v36_v11 = vmul.f32 %v65_v9, %v22_v1 }
  0x30   :  { %37 = vst [vmem:[#allocation5] sm:$0xff] %v35_v10 }
  0x31   :  { %38 = vst [vmem:[#allocation5 + $0x8] sm:$0xff] %v36_v11 }
  0x32   :  { %97 = shalt.err (!%p94_p9)
}
  0x33   :  { %48 = dma.vmem_to_hbm [thread:$0]  %s46_s12, 256, %s129_s1, [#allocation4]  }
  0x34   :  { %108 = dma.done.wait [#allocation4], 256  }
  0x35   :  { %109 = vsyncadd [#allocation4], 4294967040 }
  0x36   :  { %52 = vsyncpa [#allocation3], 1 }
  0x37   :  { %53 = vsyncpa [#allocation4], 1 }

</bundles_post_ra>
